<compile_context>
chip_gen: v7x
topology: tpu7x:2x2x1
jax: 0.10.0
libtpu: 0.0.40
codegen_flags: <defaults>
</compile_context>

<pallas_src>
import jax
import jax.numpy as jnp
from jax.experimental import pallas as pl
from jax.experimental.pallas import tpu as pltpu


def _leaky_relu(x, negative_slope=0.1):
    return jnp.where(x > 0, x, negative_slope * x)


def _round_up(x, m):
    return ((x + m - 1) // m) * m


def mlp_kernel(x_ref, w1_ref, b1_ref, w2_ref, b2_ref, w3_ref, b3_ref, o_ref):
    """Fused fc1 -> lrelu -> fc2 -> lrelu -> fc3 for one batch tile.

    x arrives f32 and is cast to bf16 in VMEM; weights are bf16 (MXU-native);
    accumulation is f32; biases add into the f32 accumulator; output is bf16.
    Dropout layers are identity at inference.
    """
    x = x_ref[...].astype(jnp.bfloat16)  # in-kernel cast: free on VPU slack

    # fc1 + LeakyReLU(0.1)
    h = jnp.dot(x, w1_ref[...], preferred_element_type=jnp.float32) + b1_ref[...]
    h = _leaky_relu(h)

    # fc2 + LeakyReLU(0.1)
    h = jnp.dot(h.astype(jnp.bfloat16), w2_ref[...],
                preferred_element_type=jnp.float32) + b2_ref[...]
    h = _leaky_relu(h)

    # fc3 (no activation); natural-width output block, bf16 store.
    out = jnp.dot(h.astype(jnp.bfloat16), w3_ref[...],
                  preferred_element_type=jnp.float32) + b3_ref[...]
    o_ref[...] = out.astype(o_ref.dtype)


def prepare_mlp_params(params):
    """One-time param prep (hoisted out of the forward call).

    Matmul weights -> bf16 (MXU input dtype); biases stay f32 so they add
    into the f32 accumulator at full precision.
    """
    w1, b1, w2, b2, w3, b3 = params
    return (w1.astype(jnp.bfloat16), b1.astype(jnp.float32),
            w2.astype(jnp.bfloat16), b2.astype(jnp.float32),
            w3.astype(jnp.bfloat16), b3.astype(jnp.float32))


def _auto_block_batch(B):
    # grid=1 single tile up to 2048 rows: saves per-step (~0.35us) overhead
    # and an extra output DMA on single-TC v5e/v6e; tiny batches don't gain
    # from v7x's second TC anyway.  Larger batches: split into an even number
    # of roughly-equal tiles (<=4096 rows each) so the "parallel" axis
    # load-balances across v7x's 2 TensorCores.  Per-row VMEM cost is tiny
    # (~80 B double-buffered), so these caps are nowhere near VMEM limits on
    # any generation (incl. v7x's 64 MiB).
    if B <= 2048:
        return _round_up(max(B, 16), 16)
    n_tiles = max(2, pl.cdiv(B, 4096))
    if n_tiles % 2:
        n_tiles += 1
    return _round_up(pl.cdiv(B, n_tiles), 16)


def mlp_forward(x, prepared_params, *, block_batch=None, out_dtype=jnp.bfloat16):
    """Run the fused MLP kernel, tiling over the (padded) batch dimension.

    `prepared_params` must come from prepare_mlp_params (bf16 weights).
    """
    w1, b1, w2, b2, w3, b3 = prepared_params
    B, D_in = x.shape
    H = w1.shape[1]
    D_out = w3.shape[1]

    if block_batch is None:
        block_batch = _auto_block_batch(B)
    assert block_batch % 16 == 0, "batch tile must respect bf16 sublane packing"

    # Pad batch so the grid divides evenly (pad rows are sliced off below).
    # This is the only wrapper-side op on x; the bf16 cast happens in-kernel.
    B_pad = _round_up(B, block_batch)
    if B_pad != B:
        x = jnp.pad(x, ((0, B_pad - B), (0, 0)))

    grid = (B_pad // block_batch,)

    in_specs = [
        pl.BlockSpec((block_batch, D_in), lambda i: (i, 0)),   # x (batch-tiled, f32)
        pl.BlockSpec((D_in, H), lambda i: (0, 0)),             # w1 (resident)
        pl.BlockSpec((1, H), lambda i: (0, 0)),                # b1
        pl.BlockSpec((H, H), lambda i: (0, 0)),                # w2
        pl.BlockSpec((1, H), lambda i: (0, 0)),                # b2
        pl.BlockSpec((H, D_out), lambda i: (0, 0)),            # w3 (natural width)
        pl.BlockSpec((1, D_out), lambda i: (0, 0)),            # b3
    ]
    # Natural-width output block: last dim == full array dim, so the (8,128)
    # rule is satisfied without zero-padding to 128 lanes.
    out_specs = pl.BlockSpec((block_batch, D_out), lambda i: (i, 0))

    out_padded = pl.pallas_call(
        mlp_kernel,
        out_shape=jax.ShapeDtypeStruct((B_pad, D_out), out_dtype),
        grid_spec=pltpu.PrefetchScalarGridSpec(
            num_scalar_prefetch=0,
            grid=grid,
            in_specs=in_specs,
            out_specs=out_specs,
        ),
        compiler_params=pltpu.CompilerParams(
            dimension_semantics=("parallel",),
            # Plenty of headroom everywhere (per-tile footprint < 1 MiB);
            # 32 MiB also fits v7x's smaller 64 MiB physical VMEM.
            vmem_limit_bytes=32 * 1024 * 1024,
        ),
    )(x, w1, b1, w2, b2, w3, b3)

    if B_pad != B:
        return out_padded[:B]
    return out_padded


def init_mlp_params(key, input_size, hidden_size, output_size):
    """Deterministic init mirroring nn.Linear shapes, stored as (in, out)."""
    ks = jax.random.split(key, 6)

    def linear(kw, kb, fan_in, fan_out):
        bound = 1.0 / jnp.sqrt(fan_in)
        w = jax.random.uniform(kw, (fan_in, fan_out), jnp.float32, -bound, bound)
        b = jax.random.uniform(kb, (1, fan_out), jnp.float32, -bound, bound)
        return w, b

    w1, b1 = linear(ks[0], ks[1], input_size, hidden_size)
    w2, b2 = linear(ks[2], ks[3], hidden_size, hidden_size)
    w3, b3 = linear(ks[4], ks[5], hidden_size, output_size)
    return (w1, b1, w2, b2, w3, b3)


def mlp_reference(x, params):
    """Plain-JAX (f32) reference for correctness checking."""
    w1, b1, w2, b2, w3, b3 = params
    h = _leaky_relu(x @ w1 + b1)
    h = _leaky_relu(h @ w2 + b2)
    return h @ w3 + b3


if __name__ == "__main__":
    # Module config: WeightMLP(input_size=16, hidden_size=32, output_size=8,
    #                          drop_out_rate=0.5) with extra_layer=False.
    input_size, hidden_size, output_size = 16, 32, 8

    key = jax.random.PRNGKey(0)
    k_x1, k_x2, k_x3, k_p = jax.random.split(key, 4)
    params = init_mlp_params(k_p, input_size, hidden_size, output_size)
    prepared = prepare_mlp_params(params)   # one-time bf16 weight prep

    def check(x, out, name):
        ref = mlp_reference(x, params)
        assert out.shape == ref.shape, f"shape mismatch ({name})"
        ok = jnp.allclose(out.astype(jnp.float32), ref, atol=5e-2, rtol=5e-2)
        assert ok, f"mismatch vs reference ({name})"

    # Case 1: small batch, single grid step.
    x1 = jax.random.normal(k_x1, (8, input_size), jnp.float32)
    out1 = jax.block_until_ready(mlp_forward(x1, prepared))
    check(x1, out1, "case 1")

    # Case 2: non-multiple-of-16 batch exercises the padded path.
    x2 = jax.random.normal(k_x2, (30, input_size), jnp.float32)
    out2 = jax.block_until_ready(mlp_forward(x2, prepared))
    check(x2, out2, "case 2")

    # Case 3: explicit small tile exercises the multi-step "parallel" grid.
    x3 = jax.random.normal(k_x3, (100, input_size), jnp.float32)
    out3 = jax.block_until_ready(mlp_forward(x3, prepared, block_batch=32))
    check(x3, out3, "case 3")

    print("KERNEL_OK")
</pallas_src>

<mosaic_0001>
module attributes {stable_mosaic.version = 11 : i64} {
  func.func @mlp_kernel(%arg0: i32, %arg1: memref<16x16xf32, #tpu.memory_space<vmem>>, %arg2: memref<16x32xbf16, #tpu.memory_space<vmem>>, %arg3: memref<1x32xf32, #tpu.memory_space<vmem>>, %arg4: memref<32x32xbf16, #tpu.memory_space<vmem>>, %arg5: memref<1x32xf32, #tpu.memory_space<vmem>>, %arg6: memref<32x8xbf16, #tpu.memory_space<vmem>>, %arg7: memref<1x8xf32, #tpu.memory_space<vmem>>, %arg8: memref<16x8xbf16, #tpu.memory_space<vmem>>) attributes {dimension_semantics = [#tpu.dimension_semantics<parallel>], iteration_bounds = array<i64: 1>, scalar_prefetch = 0 : i64, scratch_operands = 0 : i64, tpu.core_type = #tpu.core_type<tc>, window_params = [{transform_indices = @transform_0, window_bounds = array<i64: 16, 16>}, {pipeline_mode = #tpu.pipeline_mode<synchronous>, transform_indices = @transform_1, window_bounds = array<i64: 16, 32>}, {pipeline_mode = #tpu.pipeline_mode<synchronous>, transform_indices = @transform_2, window_bounds = array<i64: 1, 32>}, {pipeline_mode = #tpu.pipeline_mode<synchronous>, transform_indices = @transform_3, window_bounds = array<i64: 32, 32>}, {pipeline_mode = #tpu.pipeline_mode<synchronous>, transform_indices = @transform_4, window_bounds = array<i64: 1, 32>}, {pipeline_mode = #tpu.pipeline_mode<synchronous>, transform_indices = @transform_5, window_bounds = array<i64: 32, 8>}, {pipeline_mode = #tpu.pipeline_mode<synchronous>, transform_indices = @transform_6, window_bounds = array<i64: 1, 8>}, {transform_indices = @transform_7, window_bounds = array<i64: 16, 8>}]} {
    %c0 = arith.constant 0 : index
    %c0_0 = arith.constant 0 : index
    %0 = vector.load %arg1[%c0, %c0_0] : memref<16x16xf32, #tpu.memory_space<vmem>>, vector<16x16xf32>
    %1 = arith.truncf %0 : vector<16x16xf32> to vector<16x16xbf16>
    %c0_1 = arith.constant 0 : index
    %c0_2 = arith.constant 0 : index
    %2 = vector.load %arg2[%c0_1, %c0_2] : memref<16x32xbf16, #tpu.memory_space<vmem>>, vector<16x32xbf16>
    %cst = arith.constant dense<0.000000e+00> : vector<16x32xf32>
    %3 = tpu.matmul %1, %2, %cst {dimension_numbers = #tpu.dot_dimension_numbers<[1], [0], [0], [1], [0, 0, 1, 1], [], []>} : vector<16x16xbf16>, vector<16x32xbf16>, vector<16x32xf32> -> vector<16x32xf32>
    %c0_3 = arith.constant 0 : index
    %c0_4 = arith.constant 0 : index
    %4 = vector.load %arg3[%c0_3, %c0_4] : memref<1x32xf32, #tpu.memory_space<vmem>>, vector<1x32xf32>
    %5 = vector.broadcast %4 : vector<1x32xf32> to vector<16x32xf32>
    %6 = arith.addf %3, %5 : vector<16x32xf32>
    %cst_5 = arith.constant 0.000000e+00 : f32
    %7 = vector.broadcast %cst_5 : f32 to vector<16x32xf32>
    %8 = arith.cmpf ogt, %6, %7 : vector<16x32xf32>
    %cst_6 = arith.constant 1.000000e-01 : f32
    %9 = vector.broadcast %cst_6 : f32 to vector<16x32xf32>
    %10 = arith.mulf %9, %6 : vector<16x32xf32>
    %11 = arith.select %8, %6, %10 : vector<16x32xi1>, vector<16x32xf32>
    %12 = arith.truncf %11 : vector<16x32xf32> to vector<16x32xbf16>
    %c0_7 = arith.constant 0 : index
    %c0_8 = arith.constant 0 : index
    %13 = vector.load %arg4[%c0_7, %c0_8] : memref<32x32xbf16, #tpu.memory_space<vmem>>, vector<32x32xbf16>
    %cst_9 = arith.constant dense<0.000000e+00> : vector<16x32xf32>
    %14 = tpu.matmul %12, %13, %cst_9 {dimension_numbers = #tpu.dot_dimension_numbers<[1], [0], [0], [1], [0, 0, 1, 1], [], []>} : vector<16x32xbf16>, vector<32x32xbf16>, vector<16x32xf32> -> vector<16x32xf32>
    %c0_10 = arith.constant 0 : index
    %c0_11 = arith.constant 0 : index
    %15 = vector.load %arg5[%c0_10, %c0_11] : memref<1x32xf32, #tpu.memory_space<vmem>>, vector<1x32xf32>
    %16 = vector.broadcast %15 : vector<1x32xf32> to vector<16x32xf32>
    %17 = arith.addf %14, %16 : vector<16x32xf32>
    %cst_12 = arith.constant 0.000000e+00 : f32
    %18 = vector.broadcast %cst_12 : f32 to vector<16x32xf32>
    %19 = arith.cmpf ogt, %17, %18 : vector<16x32xf32>
    %cst_13 = arith.constant 1.000000e-01 : f32
    %20 = vector.broadcast %cst_13 : f32 to vector<16x32xf32>
    %21 = arith.mulf %20, %17 : vector<16x32xf32>
    %22 = arith.select %19, %17, %21 : vector<16x32xi1>, vector<16x32xf32>
    %23 = arith.truncf %22 : vector<16x32xf32> to vector<16x32xbf16>
    %c0_14 = arith.constant 0 : index
    %c0_15 = arith.constant 0 : index
    %24 = vector.load %arg6[%c0_14, %c0_15] : memref<32x8xbf16, #tpu.memory_space<vmem>>, vector<32x8xbf16>
    %cst_16 = arith.constant dense<0.000000e+00> : vector<16x8xf32>
    %25 = tpu.matmul %23, %24, %cst_16 {dimension_numbers = #tpu.dot_dimension_numbers<[1], [0], [0], [1], [0, 0, 1, 1], [], []>} : vector<16x32xbf16>, vector<32x8xbf16>, vector<16x8xf32> -> vector<16x8xf32>
    %c0_17 = arith.constant 0 : index
    %c0_18 = arith.constant 0 : index
    %26 = vector.load %arg7[%c0_17, %c0_18] : memref<1x8xf32, #tpu.memory_space<vmem>>, vector<1x8xf32>
    %27 = vector.broadcast %26 : vector<1x8xf32> to vector<16x8xf32>
    %28 = arith.addf %25, %27 : vector<16x8xf32>
    %29 = arith.truncf %28 : vector<16x8xf32> to vector<16x8xbf16>
    %c0_19 = arith.constant 0 : index
    %c0_20 = arith.constant 0 : index
    %30 = vector.load %arg8[%c0_19, %c0_20] : memref<16x8xbf16, #tpu.memory_space<vmem>>, vector<16x8xbf16>
    tpu.vector_store %arg8[%c0_19, %c0_20], %29 {strides = array<i32>} : memref<16x8xbf16, #tpu.memory_space<vmem>>, vector<16x8xbf16>,
    return
  }
  func.func @transform_0(%arg0: i32) -> (i32, i32) {
    %c0_i32 = arith.constant 0 : i32
    %c0_i32_0 = arith.constant 0 : i32
    return %arg0, %c0_i32 : i32, i32
  }
  func.func @transform_1(%arg0: i32) -> (i32, i32) {
    %c0_i32 = arith.constant 0 : i32
    %c0_i32_0 = arith.constant 0 : i32
    %c0_i32_1 = arith.constant 0 : i32
    return %c0_i32, %c0_i32_0 : i32, i32
  }
  func.func @transform_2(%arg0: i32) -> (i32, i32) {
    %c0_i32 = arith.constant 0 : i32
    %c0_i32_0 = arith.constant 0 : i32
    %c0_i32_1 = arith.constant 0 : i32
    return %c0_i32, %c0_i32_0 : i32, i32
  }
  func.func @transform_3(%arg0: i32) -> (i32, i32) {
    %c0_i32 = arith.constant 0 : i32
    %c0_i32_0 = arith.constant 0 : i32
    %c0_i32_1 = arith.constant 0 : i32
    return %c0_i32, %c0_i32_0 : i32, i32
  }
  func.func @transform_4(%arg0: i32) -> (i32, i32) {
    %c0_i32 = arith.constant 0 : i32
    %c0_i32_0 = arith.constant 0 : i32
    %c0_i32_1 = arith.constant 0 : i32
    return %c0_i32, %c0_i32_0 : i32, i32
  }
  func.func @transform_5(%arg0: i32) -> (i32, i32) {
    %c0_i32 = arith.constant 0 : i32
    %c0_i32_0 = arith.constant 0 : i32
    %c0_i32_1 = arith.constant 0 : i32
    return %c0_i32, %c0_i32_0 : i32, i32
  }
  func.func @transform_6(%arg0: i32) -> (i32, i32) {
    %c0_i32 = arith.constant 0 : i32
    %c0_i32_0 = arith.constant 0 : i32
    %c0_i32_1 = arith.constant 0 : i32
    return %c0_i32, %c0_i32_0 : i32, i32
  }
  func.func @transform_7(%arg0: i32) -> (i32, i32) {
    %c0_i32 = arith.constant 0 : i32
    %c0_i32_0 = arith.constant 0 : i32
    return %arg0, %c0_i32 : i32, i32
  }
}

</mosaic_0001>

<bundles_post_ra>
// kernel: tpu_custom_call.1
= control target key start
LH: loop header
LB: loop body
LE: loop exit
PB: predicated region body
PF: predicated region fallthrough
CT: control target
= control target key end

     0   :  { %12 = vsyncpa [#allocation3], 0  ;;  %s487_s0 = inlined_call_operand.vmem [shape: f32[16,16], index: 0, kind: input, shape index: {}]   ;;  %s488_s1 = inlined_call_operand.hbm [shape: bf16[16,32], index: 1, kind: input, shape index: {}]   ;;  %s489_s2 = inlined_call_operand.vmem [shape: f32[1,32], index: 2, kind: input, shape index: {}]   ;;  %s490_s3 = inlined_call_operand.hbm [shape: bf16[32,32], index: 3, kind: input, shape index: {}]   ;;  %s491_s4 = inlined_call_operand.vmem [shape: f32[1,32], index: 4, kind: input, shape index: {}]   ;;  %s492_s5 = inlined_call_operand.vmem [shape: bf16[32,8], index: 5, kind: input, shape index: {}]   ;;  %s493_s6 = inlined_call_operand.vmem [shape: f32[1,8], index: 6, kind: input, shape index: {}]   ;;  %s494_s7 = inlined_call_operand.vmem [shape: bf16[16,8], index: 7, kind: output, shape index: {}]  }
   0x1   :  { %13 = vsyncpa [#allocation5], 0  ;;  %s388_s24 = smov [#allocation2]   ;;  %s340_s28 = scalar_lea.hbm %s488_s1, 128 }
   0x2   :  { %s21_s25 = sshll.u32 %s388_s24, 4  ;;  %p341_p0 = scmp.ne.s32.totalorder %s488_s1, %s340_s28  ;;  %s22_s25 = int_to_ptr.vmem [resolvable:$true] %s21_s25 }
   0x3   :  { %p344_p1 = scmp.lt.u32.totalorder %s340_s28, %s488_s1 }
   0x5   :  { %p346_p2 = pnand %p344_p1, %p341_p0 }
   0x7   :  { %349 = shalt.err (!%p346_p2)
}
   0x8   :  { %s350_s10 = scalar_lea.vmem %s22_s25, 128  ;;  %p355_p4 = scmp.lt.s32.totalorder %s22_s25, %s22_s25 }
   0x9   :  { %p351_p3 = scmp.ne.s32.totalorder %s22_s25, %s350_s10  ;;  %p356_p5 = scmp.lt.s32.totalorder %s350_s10, %s350_s10 }
   0xb   :  { %p357_p6 = por %p356_p5, %p355_p4 }
   0xd   :  { %p358_p7 = pnand %p357_p6, %p351_p3 }
   0xf   :  { %361 = shalt.err (!%p358_p7)
}
  0x10   :  { %s389_s11 = smov 64   ;;  %s390_s12 = smov 4  }
  0x11   :  { %27 = dma.hbm_to_vmem [thread:$0]  %s488_s1, 128, %s22_s25, [#allocation3], %s389_s11, %s389_s11, %s390_s12  }
  0x12   :  { %s391_s15 = smov [#allocation4]   ;;  %s362_s19 = scalar_lea.hbm %s490_s3, 256 }
  0x13   :  { %s35_s16 = sshll.u32 %s391_s15, 4  ;;  %p363_p8 = scmp.ne.s32.totalorder %s490_s3, %s362_s19  ;;  %s36_s16 = int_to_ptr.vmem [resolvable:$true] %s35_s16 }
  0x14   :  { %p366_p9 = scmp.lt.u32.totalorder %s362_s19, %s490_s3 }
  0x16   :  { %p368_p10 = pnand %p366_p9, %p363_p8 }
  0x18   :  { %371 = shalt.err (!%p368_p10)
}
  0x19   :  { %s372_s24 = scalar_lea.vmem %s36_s16, 256  ;;  %p377_p12 = scmp.lt.s32.totalorder %s36_s16, %s36_s16 }
  0x1a   :  { %p373_p11 = scmp.ne.s32.totalorder %s36_s16, %s372_s24  ;;  %p378_p13 = scmp.lt.s32.totalorder %s372_s24, %s372_s24 }
  0x1c   :  { %p379_p0 = por %p378_p13, %p377_p12 }
  0x1e   :  { %p380_p1 = pnand %p379_p0, %p373_p11 }
  0x20   :  { %383 = shalt.err (!%p380_p1)
}
  0x21   :  { %41 = dma.hbm_to_vmem [thread:$0]  %s490_s3, 256, %s36_s16, [#allocation5], %s389_s11, %s389_s11, %s390_s12  }
  0x22   :  { %384 = dma.done.wait [#allocation3], 128  }
  0x23   :  { %385 = vsyncadd [#allocation3], 4294967168 }
  0x24   :  { %386 = dma.done.wait [#allocation5], 256  }
  0x25   :  { %387 = vsyncadd [#allocation5], 4294967040  ;;  %v392_v0 = vmov 0.0   ;;  %vm393_vm0 = vmmov 0   ;;  %v335_v1 = vld [vmem:[#allocation2] sm:$0xff]   ;;  %v56_v3 = vld [vmem:[%s487_s0 + $0x8] sm:$0xff] }
  0x26   :  { %307 = vmatprep.subr.bf16.mxu0 %v392_v0  ;;  %309 = vmatprep.mubr.msk.bf16.mxu0 %vm393_vm0, %v392_v0  ;;  %v55_v2 = vld [vmem:[%s487_s0] sm:$0xff]  ;;  %vm73_vm1 = vcmask 130048   ;;  %v336_v5 = vld [vmem:[#allocation4] sm:$0xff]   ;;  %v337_v6 = vld [vmem:[#allocation4 + $0x8] sm:$0xff]   ;;  %vm148_vm4 = vcmask 261120   ;;  %vm275_vm7 = vcmask 60416  }
  0x27   :  { %313 = vmatprep.subr.bf16.mxu1 %v392_v0  ;;  %317 = vmatprep.mubr.msk.bf16.mxu1 %vm393_vm0, %v392_v0  ;;  %v57_v4 = vpack.c.bf16 %v56_v3, %v55_v2  ;;  %v284_v7 = vld [vmem:[%s489_s2] ss:$0 sm:$0xff]  ;;  %v339_v20 = vld [vmem:[%s492_s5 + $0x8] sm:$0xff]  }
  0x28   :  { %308 = vmatpush3.bf16.msra.mxu0 %v335_v1  ;;  %314 = vmatpush3.bf16.msra.mxu1 %v336_v5  ;;  %v338_v19 = vld [vmem:[%s492_s5] sm:$0xff]  }
  0x29   :  { %321 = vmatprep.subr.bf16.mxu0 %v392_v0  ;;  %315 = vmatprep.subr.bf16.mxu1 %v392_v0  ;;  %v287_v21 = vld [vmem:[%s491_s4] ss:$0 sm:$0xff] }
  0x2a   :  { %v291_v33 = vld [vmem:[%s493_s6] ss:$0 sm:$0xff] }
  0x2b   :  { %310 = vmatmul.mubr.msk.bf16.vlgmr.msra.gmra.mrb[0].mxu0 %vm73_vm1, %v57_v4 }
  0x2c   :  { %325 = vmatprep.mubr.msk.bf16.mxu0 %vm393_vm0, %v392_v0  ;;  %316 = vmatpush3.bf16.msra.mxu1 %v337_v6 }
  0x2d   :  { %322 = vmatpush3.bf16.msra.mxu0 %v338_v19 }
  0x2e   :  { %323 = vmatprep.subr.bf16.mxu0 %v392_v0 }
  0x31   :  { %324 = vmatpush3.bf16.msra.mxu0 %v339_v20 }
  0xfe   :  { %v111_v8 = vpop.f32.mrb[0].mxu0 }
  0xff   :  { %v112_v9 = vadd.f32 %v284_v7, %v111_v8  ;;  %v311_v10 = vpop.f32.mrb[1].mxu0 }
 0x100   :  { %v114_v11 = vpop.f32.mrb[2].mxu0 }
 0x101   :  { %v120_v12 = vmul.f32 0.1, %v112_v9  ;;  %v115_v13 = vadd.f32 %v284_v7, %v114_v11  ;;  %v312_v14 = vpop.f32.mrb[3].mxu0  ;;  %vm118_vm2 = vcmp.gt.f32.partialorder %v112_v9, 0.0 }
 0x103   :  { %vm119_vm3 = vcmp.gt.f32.partialorder %v115_v13, 0.0  ;;  %v121_v15 = vmul.f32 0.1, %v115_v13  ;;  %v122_v16 = vsel %vm118_vm2, %v112_v9, %v120_v12 }
 0x105   :  { %v123_v17 = vsel %vm119_vm3, %v115_v13, %v121_v15 }
 0x106   :  { %v124_v18 = vpack.c.bf16 %v123_v17, %v122_v16 }
 0x108   :  { %318 = vmatmul.mubr.msk.bf16.vlgmr.msra.gmra.mrb[0].mxu1 %vm148_vm4, %v124_v18 }
 0x1db   :  { %v186_v22 = vpop.f32.mrb[0].mxu1 }
 0x1dc   :  { %v187_v23 = vadd.f32 %v287_v21, %v186_v22  ;;  %v319_v24 = vpop.f32.mrb[1].mxu1 }
 0x1dd   :  { %v189_v25 = vpop.f32.mrb[2].mxu1 }
 0x1de   :  { %v195_v26 = vmul.f32 0.1, %v187_v23  ;;  %v190_v27 = vadd.f32 %v287_v21, %v189_v25  ;;  %v320_v28 = vpop.f32.mrb[3].mxu1  ;;  %vm193_vm5 = vcmp.gt.f32.partialorder %v187_v23, 0.0 }
 0x1e0   :  { %vm194_vm6 = vcmp.gt.f32.partialorder %v190_v27, 0.0  ;;  %v196_v29 = vmul.f32 0.1, %v190_v27  ;;  %v197_v30 = vsel %vm193_vm5, %v187_v23, %v195_v26 }
 0x1e2   :  { %v198_v31 = vsel %vm194_vm6, %v190_v27, %v196_v29 }
 0x1e3   :  { %v199_v32 = vpack.c.bf16 %v198_v31, %v197_v30 }
 0x1e5   :  { %326 = vmatmul.mubr.msk.bf16.vlgmr.msra.gmra.mrb[4].mxu0 %vm148_vm4, %v199_v32 }
 0x2b8   :  { %v260_v34 = vpop.f32.mrb[4].mxu0 }
 0x2b9   :  { %v261_v35 = vadd.f32 %v291_v33, %v260_v34  ;;  %v327_v36 = vpop.f32.mrb[5].mxu0 }
 0x2ba   :  { %v263_v37 = vpop.f32.mrb[6].mxu0 }
 0x2bb   :  { %v297_v38 = vpack.c.bf16 %v261_v35, %v261_v35  ;;  %v264_v39 = vadd.f32 %v291_v33, %v263_v37  ;;  %v328_v40 = vpop.f32.mrb[7].mxu0 }
 0x2bd   :  { %276 = vst.msk [vmem:[%s494_s7] sm:$0xf] %vm275_vm7, %v297_v38  ;;  %v298_v41 = vpack.c.bf16 %v264_v39, %v264_v39 }
 0x2bf   :  { %277 = vst.msk [vmem:[%s494_s7 + $0x4] sm:$0xf] %vm275_vm7, %v298_v41 }
 0x2c0   :  { %282 = vsyncpa [#allocation3], 1 }
 0x2c1   :  { %283 = vsyncpa [#allocation5], 1 }

</bundles_post_ra>
